<compile_context>
chip_gen: v6e
topology: v6e:2x2x1
jax: 0.10.0
libtpu: 0.0.40
codegen_flags: <defaults>
</compile_context>

<pallas_src>
import functools

import jax
import jax.numpy as jnp
from jax.experimental import pallas as pl
from jax.experimental.pallas import tpu as pltpu


def _round_up(a, b):
    return (a + b - 1) // b * b


def _gem_kernel(scal_ref, x_ref, a_ref, o_ref, *, eps, inv_w, chunk):
    """One grid step: GeM-pool `rows` flattened (n*c) rows over every w-window.

    scal_ref: SMEM f32[3] = [p, 1/p, mean_floor]     (hoisted scalars)
    x_ref:    VMEM [rows, h*w]   lane-dense input slab (rows % chunk == 0)
    a_ref:    VMEM [h*w, h]      bf16 0/1 window-selector matrix
    o_ref:    VMEM [rows, h]
    """
    p = scal_ref[0]
    inv_p = scal_ref[1]
    floor = scal_ref[2]
    rows = x_ref.shape[0]
    n_chunks = rows // chunk

    a_bf = a_ref[...]                                   # hoisted: (h*w, h) bf16

    def body(ci, carry):
        r0 = pl.multiple_of(ci * chunk, chunk)
        xc = x_ref[pl.ds(r0, chunk), :].astype(jnp.float32)   # bf16 inputs OK
        xc = jnp.maximum(xc, eps)                       # clamp(min=eps) > 0
        xp = jnp.exp(p * jnp.log(xc))                   # x**p: one EUP pass
        # Segmented sum over every w-wide window on the MXU (bf16 operands,
        # f32 accumulation); the 0/1 selector matrix is exact in bf16.
        s = jnp.dot(xp.astype(jnp.bfloat16), a_bf,
                    preferred_element_type=jnp.float32)        # (chunk, h)
        mean = jnp.maximum(s * inv_w, floor)            # mean over w + FTZ guard
        out = jnp.exp(inv_p * jnp.log(mean))            # mean**(1/p), tiny slab
        o_ref[pl.ds(r0, chunk), :] = out.astype(o_ref.dtype)
        return carry

    jax.lax.fori_loop(0, n_chunks, body, 0, unroll=n_chunks <= 4)


def _plan_blocks(n_rows, bytes_per_row, block_rows=None):
    """Pick (rows_per_block, chunk, big_vmem) per TPU generation."""
    try:
        vmem_cap = int(pltpu.get_tpu_info().vmem_capacity_bytes)
    except Exception:                                   # query unavailable
        vmem_cap = 64 << 20                             # conservative (v7x-class)
    big_vmem = vmem_cap >= (100 << 20)                  # v5e / v6e: 128 MiB per TC

    if block_rows is None:
        # v5e/v6e are HBM-bound: ~16 MiB input slabs amortize per-step overhead.
        # v7x has 64 MiB VMEM per TC: keep the double-buffered slab ~6 MiB.
        target = (16 << 20) if big_vmem else (6 << 20)
        rows = max(8, target // max(bytes_per_row, 1))
        rows = min(rows, _round_up(n_rows, 8))
        if (not big_vmem) and n_rows >= 2048:
            # v7x: 2 TensorCores share "parallel" grid axes -> keep >= 2 steps.
            rows = min(rows, _round_up((n_rows + 1) // 2, 8))
    else:
        rows = max(8, int(block_rows))

    rows = _round_up(rows, 8)
    if rows > 1024:                                     # inner chunk bounds f32 temps
        rows = (rows // 1024) * 1024
        chunk = 1024
    else:
        chunk = rows
    return rows, chunk, big_vmem


def gem_forward(x, p, eps=1e-6, *, block_rows=None):
    """Exact GeM.forward: x [n,c,h,w] -> [n,c,h,1]."""
    n, c, h, w = x.shape
    hw = h * w
    r = n * c

    x2 = x.reshape(r, hw)                               # contiguous -> free reshape
    rows, chunk, big_vmem = _plan_blocks(r, hw * x2.dtype.itemsize, block_rows)
    r_pad = _round_up(r, rows)
    if r_pad > r:                                       # tail-pad rows (discarded)
        x2 = jnp.concatenate(
            [x2, jnp.ones((r_pad - r, hw), dtype=x2.dtype)], axis=0)

    # 0/1 window-selector matrix (exact in bf16); the 1/w scale stays in f32.
    seg = jnp.arange(hw, dtype=jnp.int32) // w
    a_mat = (seg[:, None] == jnp.arange(h, dtype=jnp.int32)[None, :]
             ).astype(jnp.bfloat16)

    # Hoisted scalars -> SMEM: [p, 1/p, mean floor]. The floor guards against
    # TPU flush-to-zero when an entire window is clamped (eps**p ~ 1e-39).
    p_s = p.reshape(-1)[0].astype(jnp.float32)
    tiny = jnp.float32(jnp.finfo(jnp.float32).tiny)
    floor = jnp.maximum(jnp.exp(p_s * jnp.log(jnp.float32(eps))), tiny)
    scalars = jnp.stack([p_s, 1.0 / p_s, floor])

    grid = (r_pad // rows,)

    # Per-generation VMEM budget: double-buffered in/out blocks + chunk temps.
    in_blk = rows * hw * x2.dtype.itemsize
    out_blk = rows * h * x2.dtype.itemsize
    a_bytes = hw * h * 2
    temp_bytes = chunk * hw * 12 + chunk * h * 12       # f32 clamp/pow + bf16 + pooled
    needed = 2 * (in_blk + out_blk) + a_bytes + temp_bytes + (4 << 20)
    vmem_cap_limit = (64 << 20) if big_vmem else (40 << 20)
    vmem_limit = int(min(max(needed, 24 << 20), vmem_cap_limit))

    cost = pl.CostEstimate(
        flops=2 * r_pad * hw * h,                       # MXU segmented sum
        transcendentals=2 * r_pad * (hw + h),           # exp+log for pow and root
        bytes_accessed=r_pad * (hw + h) * x2.dtype.itemsize + a_bytes,
    )

    out = pl.pallas_call(
        functools.partial(_gem_kernel, eps=float(eps), inv_w=1.0 / float(w),
                          chunk=chunk),
        grid=grid,
        in_specs=[
            pl.BlockSpec(memory_space=pltpu.MemorySpace.SMEM),   # [p, 1/p, floor]
            pl.BlockSpec((rows, hw), lambda i: (i, 0)),          # lane-dense x slab
            pl.BlockSpec((hw, h), lambda i: (0, 0)),             # selector matrix
        ],
        out_specs=pl.BlockSpec((rows, h), lambda i: (i, 0)),
        out_shape=jax.ShapeDtypeStruct((r_pad, h), x2.dtype),
        compiler_params=pltpu.CompilerParams(
            dimension_semantics=("parallel",),
            vmem_limit_bytes=vmem_limit,
        ),
        cost_estimate=cost,
    )(scalars, x2, a_mat)

    return out[:r].reshape(n, c, h, 1)


# ----------------------------- pure-JAX reference -----------------------------

def gem_ref(x, p, eps=1e-6):
    """Mirror of the PyTorch GeM forward: avg_pool2d over (1, w)."""
    ps = p.reshape(-1)[0]
    z = jnp.maximum(x, eps)
    z = jnp.mean(jnp.power(z, ps), axis=-1, keepdims=True)
    return jnp.power(z, 1.0 / ps)


if __name__ == "__main__":
    key = jax.random.PRNGKey(0)
    p_param = jnp.ones((1,), dtype=jnp.float32) * 6.5   # module __init__: ones(1)*6.5

    # 1) Module-sized input (exact GeM forward).
    n, c, h, w = 2, 4, 16, 16
    x = jax.random.uniform(key, (n, c, h, w), dtype=jnp.float32,
                           minval=0.05, maxval=1.0)
    out = jax.block_until_ready(gem_forward(x, p_param, eps=1e-6))
    ref = gem_ref(x, p_param, eps=1e-6)
    assert out.shape == (n, c, h, 1), out.shape
    # rtol 2e-3: bf16 MXU operands for x**p add <= ~0.06% after the 1/p root.
    assert jnp.allclose(out, ref, rtol=2e-3, atol=1e-6), \
        float(jnp.max(jnp.abs(out - ref)))

    # 2) Non-power-of-two w, row padding, values that touch the eps clamp.
    n2, c2, h2, w2 = 3, 5, 8, 24
    x2 = jax.random.uniform(jax.random.PRNGKey(1), (n2, c2, h2, w2),
                            dtype=jnp.float32, minval=0.0, maxval=1.0)
    out2 = jax.block_until_ready(gem_forward(x2, p_param, eps=1e-6))
    ref2 = gem_ref(x2, p_param, eps=1e-6)
    assert out2.shape == (n2, c2, h2, 1), out2.shape
    assert jnp.allclose(out2, ref2, rtol=2e-3, atol=1e-6), \
        float(jnp.max(jnp.abs(out2 - ref2)))

    # 3) Force a small row block so the multi-step pipelined grid path runs.
    n3, c3, h3, w3 = 4, 8, 16, 16
    x3 = jax.random.uniform(jax.random.PRNGKey(2), (n3, c3, h3, w3),
                            dtype=jnp.float32, minval=0.05, maxval=1.0)
    out3 = jax.block_until_ready(gem_forward(x3, p_param, eps=1e-6, block_rows=8))
    ref3 = gem_ref(x3, p_param, eps=1e-6)
    assert out3.shape == (n3, c3, h3, 1), out3.shape
    assert jnp.allclose(out3, ref3, rtol=2e-3, atol=1e-6), \
        float(jnp.max(jnp.abs(out3 - ref3)))

    print("KERNEL_OK")
</pallas_src>

<mosaic_0001>
module attributes {stable_mosaic.version = 11 : i64} {
  func.func @_gem_kernel(%arg0: i32, %arg1: memref<3xf32, #tpu.memory_space<smem>>, %arg2: memref<8x256xf32, #tpu.memory_space<vmem>>, %arg3: memref<256x16xbf16, #tpu.memory_space<vmem>>, %arg4: memref<8x16xf32, #tpu.memory_space<vmem>>) attributes {dimension_semantics = [#tpu.dimension_semantics<parallel>], iteration_bounds = array<i64: 1>, scalar_prefetch = 0 : i64, scratch_operands = 0 : i64, tpu.core_type = #tpu.core_type<tc>, window_params = [{transform_indices = @transform_0, window_bounds = array<i64: 3>}, {transform_indices = @transform_1, window_bounds = array<i64: 8, 256>}, {pipeline_mode = #tpu.pipeline_mode<synchronous>, transform_indices = @transform_2, window_bounds = array<i64: 256, 16>}, {transform_indices = @transform_3, window_bounds = array<i64: 8, 16>}]} {
    %c0 = arith.constant 0 : index
    %0 = memref.load %arg1[%c0] : memref<3xf32, #tpu.memory_space<smem>>
    %c1 = arith.constant 1 : index
    %1 = memref.load %arg1[%c1] : memref<3xf32, #tpu.memory_space<smem>>
    %c2 = arith.constant 2 : index
    %2 = memref.load %arg1[%c2] : memref<3xf32, #tpu.memory_space<smem>>
    %c0_0 = arith.constant 0 : index
    %c0_1 = arith.constant 0 : index
    %3 = vector.load %arg3[%c0_0, %c0_1] : memref<256x16xbf16, #tpu.memory_space<vmem>>, vector<256x16xbf16>
    %c0_i32 = arith.constant 0 : i32
    %c8_i32 = arith.constant 8 : i32
    %4 = arith.muli %c0_i32, %c8_i32 : i32
    %5 = tpu.assume_multiple %4, 8 : i32
    %6 = arith.index_cast %5 : i32 to index
    %c0_2 = arith.constant 0 : index
    %7 = vector.load %arg2[%6, %c0_2] : memref<8x256xf32, #tpu.memory_space<vmem>>, vector<8x256xf32>
    %cst = arith.constant 9.99999997E-7 : f32
    %8 = vector.broadcast %cst : f32 to vector<8x256xf32>
    %9 = arith.maximumf %7, %8 : vector<8x256xf32>
    %10 = math.log %9 : vector<8x256xf32>
    %11 = vector.broadcast %0 : f32 to vector<8x256xf32>
    %12 = arith.mulf %11, %10 : vector<8x256xf32>
    %13 = math.exp %12 : vector<8x256xf32>
    %14 = arith.truncf %13 : vector<8x256xf32> to vector<8x256xbf16>
    %cst_3 = arith.constant dense<0.000000e+00> : vector<8x16xf32>
    %15 = tpu.matmul %14, %3, %cst_3 {dimension_numbers = #tpu.dot_dimension_numbers<[1], [0], [0], [1], [0, 0, 1, 1], [], []>} : vector<8x256xbf16>, vector<256x16xbf16>, vector<8x16xf32> -> vector<8x16xf32>
    %cst_4 = arith.constant 6.250000e-02 : f32
    %16 = vector.broadcast %cst_4 : f32 to vector<8x16xf32>
    %17 = arith.mulf %15, %16 : vector<8x16xf32>
    %18 = vector.broadcast %2 : f32 to vector<8x16xf32>
    %19 = arith.maximumf %17, %18 : vector<8x16xf32>
    %20 = math.log %19 : vector<8x16xf32>
    %21 = vector.broadcast %1 : f32 to vector<8x16xf32>
    %22 = arith.mulf %21, %20 : vector<8x16xf32>
    %23 = math.exp %22 : vector<8x16xf32>
    %24 = arith.index_cast %5 : i32 to index
    %c0_5 = arith.constant 0 : index
    %25 = vector.load %arg4[%24, %c0_5] : memref<8x16xf32, #tpu.memory_space<vmem>>, vector<8x16xf32>
    tpu.vector_store %arg4[%24, %c0_5], %23 {strides = array<i32>} : memref<8x16xf32, #tpu.memory_space<vmem>>, vector<8x16xf32>,
    %c1_i32 = arith.constant 1 : i32
    return
  }
  func.func @transform_0(%arg0: i32) -> i32 {
    %c0_i32 = arith.constant 0 : i32
    %c0_i32_0 = arith.constant 0 : i32
    return %c0_i32 : i32
  }
  func.func @transform_1(%arg0: i32) -> (i32, i32) {
    %c0_i32 = arith.constant 0 : i32
    %c0_i32_0 = arith.constant 0 : i32
    return %arg0, %c0_i32 : i32, i32
  }
  func.func @transform_2(%arg0: i32) -> (i32, i32) {
    %c0_i32 = arith.constant 0 : i32
    %c0_i32_0 = arith.constant 0 : i32
    %c0_i32_1 = arith.constant 0 : i32
    return %c0_i32, %c0_i32_0 : i32, i32
  }
  func.func @transform_3(%arg0: i32) -> (i32, i32) {
    %c0_i32 = arith.constant 0 : i32
    %c0_i32_0 = arith.constant 0 : i32
    return %arg0, %c0_i32 : i32, i32
  }
}

</mosaic_0001>

<bundles_post_ra>
// kernel: tpu_custom_call.1
= control target key start
LH: loop header
LB: loop body
LE: loop exit
PB: predicated region body
PF: predicated region fallthrough
CT: control target
= control target key end

     0   :  { %8 = vsyncpa [#allocation4], 0  ;;  %s434_s0 = inlined_call_operand.vmem [shape: f32[3], index: 0, kind: input, shape index: {}]   ;;  %s435_s1 = inlined_call_operand.vmem [shape: f32[8,256], index: 1, kind: input, shape index: {}]   ;;  %s436_s2 = inlined_call_operand.vmem [shape: bf16[256,16], index: 2, kind: input, shape index: {}]   ;;  %s437_s3 = inlined_call_operand.hbm [shape: f32[8,16], index: 3, kind: output, shape index: {}]  }
   0x1   :  { %9 = vsyncpa [#allocation3], 0  ;;  %s16_s14 = sshll.u32 %s434_s0, 4  ;;  %s17_s14 = int_to_ptr.vmem [resolvable:$true] %s16_s14 }
   0x2   :  { %s316_s15 = scalar_lea.vmem %s17_s14, 16  ;;  %p321_p1 = scmp.lt.s32.totalorder %s17_s14, %s17_s14 }
   0x3   :  { %p317_p0 = scmp.ne.s32.totalorder %s17_s14, %s316_s15  ;;  %p322_p2 = scmp.lt.s32.totalorder %s316_s15, %s316_s15 }
   0x5   :  { %p323_p3 = por %p322_p2, %p321_p1 }
   0x7   :  { %p324_p4 = pnand %p323_p3, %p317_p0 }
   0x9   :  { %327 = shalt.err (!%p324_p4)
}
   0xa   :  { %s352_s16 = smov [#allocation2]  }
   0xb   :  { %19 = dma.vmem_to_smem %s17_s14, 16, %s352_s16, [#allocation4]  }
   0xc   :  { %348 = dma.done.wait [#allocation4], 16  }
   0xd   :  { %349 = vsyncadd [#allocation4], 4294967280 }
   0xe   :  { %27 = sfence }
   0xf   :  { %v288_v0 = vld [vmem:[%s436_s2 + $0x78] sm:$0xff]   ;;  %v290_v2 = vld [vmem:[%s436_s2 + $0x70] sm:$0xff]   ;;  %v292_v4 = vld [vmem:[%s436_s2 + $0x68] sm:$0xff]   ;;  %s29_s21 = sld [smem:[#allocation2]]  ;;  %s353_s25 = smov [#allocation5]   ;;  %vm229_vm0 = vcmask 130048  }
  0x10   :  { %v289_v1 = vld [vmem:[%s436_s2 + $0x38] sm:$0xff]   ;;  %264 = vmatprep.subr.bf16.mxu0 %v288_v0  ;;  %v291_v3 = vld [vmem:[%s436_s2 + $0x30] sm:$0xff]   ;;  %v293_v5 = vld [vmem:[%s436_s2 + $0x28] sm:$0xff]   ;;  %s246_s24 = sld [smem:[#allocation2 + $0x1]]  ;;  %s237_s26 = sshll.u32 %s353_s25, 4  ;;  %s238_s26 = int_to_ptr.vmem [resolvable:$true] %s237_s26 }
  0x11   :  { %265 = vmatpush3.bf16.msra.mxu0 %v289_v1  ;;  %v294_v6 = vld [vmem:[%s436_s2 + $0x60] sm:$0xff]   ;;  %v296_v8 = vld [vmem:[%s436_s2 + $0x58] sm:$0xff]   ;;  %v298_v10 = vld [vmem:[%s436_s2 + $0x50] sm:$0xff]   ;;  %s328_s27 = scalar_lea.vmem %s238_s26, 128  ;;  %p333_p6 = scmp.lt.s32.totalorder %s238_s26, %s238_s26 }
  0x12   :  { %266 = vmatprep.subr.bf16.mxu0 %v290_v2  ;;  %v295_v7 = vld [vmem:[%s436_s2 + $0x20] sm:$0xff]   ;;  %v297_v9 = vld [vmem:[%s436_s2 + $0x18] sm:$0xff]   ;;  %v68_v12 = vld [vmem:[%s435_s1 + $0x8] sm:$0xff]  ;;  %p329_p5 = scmp.ne.s32.totalorder %s238_s26, %s328_s27  ;;  %p334_p7 = scmp.lt.s32.totalorder %s328_s27, %s328_s27 }
  0x13   :  { %v67_v11 = vld [vmem:[%s435_s1] sm:$0xff]  ;;  %v70_v14 = vmax.f32 %v68_v12, 1e-06  ;;  %v299_v15 = vld [vmem:[%s436_s2 + $0x10] sm:$0xff]   ;;  %v300_v16 = vld [vmem:[%s436_s2 + $0x48] sm:$0xff]  }
  0x14   :  { %v69_v13 = vmax.f32 %v67_v11, 1e-06  ;;  %v301_v17 = vld [vmem:[%s436_s2 + $0x8] sm:$0xff]   ;;  %v302_v18 = vld [vmem:[%s436_s2 + $0x40] sm:$0xff]   ;;  %p335_p8 = por %p334_p7, %p333_p6 }
  0x15   :  { %267 = vmatpush3.bf16.msra.mxu0 %v291_v3  ;;  %v303_v19 = vld [vmem:[%s436_s2] sm:$0xff]   ;;  %v75_v21 = vstv %s29_s21  ;;  %s247_s2 = sld [smem:[#allocation2 + $0x2]] }
  0x16   :  { %268 = vmatprep.subr.bf16.mxu0 %v292_v4  ;;  %304 = vlog2.f32 %v69_v13  ;;  %v225_v42 = vstv %s246_s24  ;;  %p336_p9 = pnand %p335_p8, %p329_p5 }
  0x17   :  { %306 = vlog2.f32 %v70_v14 }
  0x19   :  { %269 = vmatpush3.bf16.msra.mxu0 %v293_v5 }
  0x1a   :  { %270 = vmatprep.subr.bf16.mxu0 %v294_v6 }
  0x1b   :  { %v221_v36 = vstv %s247_s2 }
  0x1d   :  { %271 = vmatpush3.bf16.msra.mxu0 %v295_v7 }
  0x1e   :  { %272 = vmatprep.subr.bf16.mxu0 %v296_v8 }
  0x21   :  { %273 = vmatpush3.bf16.msra.mxu0 %v297_v9 }
  0x22   :  { %274 = vmatprep.subr.bf16.mxu0 %v298_v10 }
  0x23   :  { %v305_v20 = vpop.eup %304 }
  0x24   :  { %v307_v22 = vpop.eup %306  ;;  %v72_v23 = vmul.f32 0.6931472, %v305_v20 }
  0x25   :  { %275 = vmatpush3.bf16.msra.mxu0 %v299_v15  ;;  %v74_v24 = vmul.f32 0.6931472, %v307_v22 }
  0x26   :  { %276 = vmatprep.subr.bf16.mxu0 %v300_v16  ;;  %v76_v25 = vmul.f32 %v75_v21, %v72_v23 }
  0x27   :  { %v77_v26 = vmul.f32 %v75_v21, %v74_v24 }
  0x28   :  { %v78_v27 = vmul.f32 1.442695, %v76_v25 }
  0x29   :  { %277 = vmatpush3.bf16.msra.mxu0 %v301_v17  ;;  %v80_v28 = vmul.f32 1.442695, %v77_v26 }
  0x2a   :  { %278 = vmatprep.subr.bf16.mxu0 %v302_v18  ;;  %308 = vpow2.f32 %v78_v27 }
  0x2b   :  { %310 = vpow2.f32 %v80_v28 }
  0x2d   :  { %279 = vmatpush3.bf16.msra.mxu0 %v303_v19 }
  0x37   :  { %v309_v29 = vpop.eup %308 }
  0x38   :  { %v311_v30 = vpop.eup %310  ;;  %v82_v31 = vpack.c.bf16 %v309_v29, %v309_v29 }
  0x39   :  { %v83_v32 = vpack.c.bf16 %v311_v30, %v311_v30 }
  0x3b   :  { %212 = vmatprep.mubr.bf16.mxu0 %v83_v32 }
  0x3c   :  { %213 = vmatmul.mubr.bf16.vlgmr.msra.gmra.mxu0 %v82_v31 }
  0xfc   :  { %v280_v33 = vpop.f32.mrf.mxu0 }
  0xfe   :  { %v281_v34 = vpop.f32.mrf.mxu0 }
  0xff   :  { %v282_v35 = vadd.f32 %v281_v34, %v280_v33 }
 0x100   :  { %v283_v37 = vpop.f32.mrf.mxu0 }
 0x101   :  { %v220_v38 = vmul.f32 0.0625, %v282_v35 }
 0x102   :  { %v284_v39 = vpop.f32.mrf.mxu0 }
 0x103   :  { %v222_v40 = vmax.f32 %v220_v38, %v221_v36 }
 0x105   :  { %312 = vlog2.f32 %v222_v40 }
 0x112   :  { %v313_v41 = vpop.eup %312 }
 0x113   :  { %v224_v43 = vmul.f32 0.6931472, %v313_v41 }
 0x115   :  { %v226_v44 = vmul.f32 %v225_v42, %v224_v43 }
 0x117   :  { %v227_v45 = vmul.f32 1.442695, %v226_v44 }
 0x119   :  { %314 = vpow2.f32 %v227_v45 }
 0x126   :  { %v315_v46 = vpop.eup %314 }
 0x127   :  { %230 = vst.msk [vmem:[#allocation5] sm:$0xff] %vm229_vm0, %v315_v46 }
 0x128   :  { %339 = shalt.err (!%p336_p9)
}
 0x129   :  { %240 = dma.vmem_to_hbm [thread:$0]  %s238_s26, 128, %s437_s3, [#allocation3]  }
 0x12a   :  { %350 = dma.done.wait [#allocation3], 128  }
 0x12b   :  { %351 = vsyncadd [#allocation3], 4294967168 }
 0x12c   :  { %244 = vsyncpa [#allocation3], 1 }
 0x12d   :  { %245 = vsyncpa [#allocation4], 1 }

</bundles_post_ra>
